<compile_context>
chip_gen: v5e
topology: v5e:2x2
jax: 0.10.0
libtpu: 0.0.40
codegen_flags: <defaults>
</compile_context>

<pallas_src>
import functools

import jax
import jax.numpy as jnp
from jax.experimental import pallas as pl
from jax.experimental.pallas import tpu as pltpu


def _patch_embed_kernel(x_ref, w_ref, bpos_ref, o_ref, acc_ref, *, num_channels):
    """One grid step: add one input channel's contribution for one token tile.

    x_ref:    (1, 1, tg, G*s2)  token tile of a single channel (contiguous DMA)
    w_ref:    (C, G*s2, G*E)    channel-major (block-diagonal G-packed) weight,
                                resident in VMEM (constant index_map => 1 fetch)
    bpos_ref: (1, G*E)          bias + positions, folded and G-tiled
    o_ref:    (1, tg, G*E)      output tile (G tokens packed per 128-lane row)
    acc_ref:  (tg, G*E) f32     VMEM accumulator, lives across the channel axis
    """
    c = pl.program_id(2)

    @pl.when(c == 0)
    def _init():
        acc_ref[...] = jnp.zeros_like(acc_ref)

    # Contraction over this channel's s2 patch columns (per packed token) on
    # the MXU; f32 accumulation.  No transposes/reshapes on VMEM values.
    acc_ref[...] += jnp.dot(x_ref[0, 0], w_ref[c],
                            preferred_element_type=jnp.float32)

    @pl.when(c == num_channels - 1)
    def _finalize():
        o_ref[0, :, :] = (acc_ref[...] + bpos_ref[...]).astype(o_ref.dtype)


def patch_embedding_linear(x, weight, bias, cls_token, positions, *,
                           patch_size, out_dtype=jnp.float32,
                           tokens_per_tile=1024):
    """Forward pass equivalent to PatchEmbedding_Linear.forward.

    x:         (B, C, H, W)
    weight:    (E, D)  nn.Linear weight, D = patch_size * C
    bias:      (E,)
    cls_token: (1, 1, E)
    positions: (1, 1, E)   (single vector broadcast over all tokens)
    returns:   (B, N + 1, E), N = H * (W // patch_size)
    """
    B, C, H, W = x.shape
    s2 = patch_size
    assert W % s2 == 0, "W must be divisible by patch_size"
    N = H * (W // s2)
    D = s2 * C
    E = weight.shape[0]
    assert weight.shape == (E, D)
    assert positions.size == E and cls_token.size == E  # fold is exact only then

    f32 = jnp.float32
    out_itemsize = jnp.dtype(out_dtype).itemsize

    # ---- token-packing factor G: pack G tokens per 128-lane output row so the
    # stores are lane-dense even when E < 128 (no in-kernel relayout needed).
    G = 1
    if E < 128 and 128 % E == 0:
        g = 128 // E
        if N % g == 0 and C * (g * s2) * (g * E) * 4 <= (8 << 20):
            G = g
    NG = N // G  # packed-token rows

    # ---- tile size over packed rows (second-minor block dim: multiple of 8
    # or full extent).  ~tokens_per_tile tokens per grid step.
    if NG % 8 == 0:
        tg = min(max(1, tokens_per_tile // G), NG)
        tg = max(8, (tg // 8) * 8)
        tg = min(tg, NG)
    else:
        tg = NG  # full extent is always a legal block dim
    num_tiles = pl.cdiv(NG, tg)
    # TODO(synk): for very large C (e.g. the module default C=158) chunk the
    # channel axis (several channels per grid step) to amortize the ~0.35us
    # per-step overhead; with small C the per-channel axis is fine.

    # ---- one-time wrapper-side parameter prep (tiny) ----
    # weight[e, j*C + c]  ->  w_r[c, j, e]   (channel-major, patch-col, emb)
    w_r = weight.astype(f32).T.reshape(s2, C, E).transpose(1, 0, 2)   # (C, s2, E)
    if G > 1:
        # Block-diagonal expansion: one MXU pass emits G packed tokens per row.
        eye = jnp.eye(G, dtype=f32)
        w_k = jnp.einsum('ik,cje->cijke', eye, w_r).reshape(C, G * s2, G * E)
    else:
        w_k = w_r
    pos_row = positions.reshape(1, E).astype(f32)
    bpos = jnp.tile(bias.reshape(1, E).astype(f32) + pos_row, (1, G))  # (1, G*E)
    cls_pos = (cls_token.reshape(1, 1, E).astype(f32)
               + pos_row.reshape(1, 1, E))                             # (1, 1, E)

    # Free contiguous reshape: token n's patch columns x[b, c, h, w*s2:(w+1)*s2]
    # are already contiguous in (H, W), so (B,C,H,W) -> (B,C,NG,G*s2) moves no data.
    x_k = x.astype(f32).reshape(B, C, NG, G * s2)

    kernel = functools.partial(_patch_embed_kernel, num_channels=C)

    # VMEM budget: double-buffered x/out blocks + resident weight + accumulator.
    vmem_est = (2 * (tg * G * s2 * 4 + tg * G * E * out_itemsize)
                + 2 * (w_k.size * 4 + bpos.size * 4)
                + tg * G * E * 4 + (2 << 20))
    vmem_limit = int(min(max(vmem_est, 32 << 20), 64 << 20))   # v7x cap: 64 MiB

    tokens = pl.pallas_call(
        kernel,
        out_shape=jax.ShapeDtypeStruct((B, NG, G * E), out_dtype),
        grid_spec=pltpu.PrefetchScalarGridSpec(
            num_scalar_prefetch=0,
            grid=(B, num_tiles, C),                 # reduction (channel) axis last
            in_specs=[
                pl.BlockSpec((1, 1, tg, G * s2), lambda b, t, c: (b, c, t, 0)),
                pl.BlockSpec((C, G * s2, G * E), lambda b, t, c: (0, 0, 0)),
                pl.BlockSpec((1, G * E), lambda b, t, c: (0, 0)),
            ],
            out_specs=pl.BlockSpec((1, tg, G * E), lambda b, t, c: (b, t, 0)),
            scratch_shapes=[pltpu.VMEM((tg, G * E), jnp.float32)],
        ),
        compiler_params=pltpu.CompilerParams(
            dimension_semantics=("parallel", "parallel", "arbitrary"),
            vmem_limit_bytes=vmem_limit),
    )(x_k, w_k, bpos)

    tokens = tokens.reshape(B, N, E)                 # free contiguous un-packing
    cls_rows = jnp.broadcast_to(cls_pos.astype(out_dtype), (B, 1, E))
    # TODO(synk): for output-write-bound shapes, fuse the cls row via a manual
    # output DMA (element offsets) instead of this small wrapper-side concat.
    return jnp.concatenate([cls_rows, tokens.astype(out_dtype)], axis=1)


def _reference(x, weight, bias, cls_token, positions, *, patch_size):
    """Pure-JAX reference mirroring the PyTorch forward."""
    x = x.astype(jnp.float32)
    B, C, H, W = x.shape
    s2 = patch_size
    h, w = H, W // s2
    patches = (
        x.reshape(B, C, h, 1, w, s2)
         .transpose(0, 2, 4, 3, 5, 1)          # b h w s1 s2 c
         .reshape(B, h * w, s2 * C)
    )
    y = patches @ weight.T + bias                                 # (B, N, E)
    cls = jnp.broadcast_to(cls_token, (B, 1, cls_token.shape[-1]))
    y = jnp.concatenate([cls, y], axis=1)
    y = y + positions                                             # (1,1,E) broadcast
    return y


if __name__ == "__main__":
    def run_case(key, B, C, H, W, patch_size, emb_size, tokens_per_tile):
        D = patch_size * C
        kx, kw, kb, kc, kp = jax.random.split(key, 5)
        x = jax.random.normal(kx, (B, C, H, W), dtype=jnp.float32)
        weight = jax.random.normal(kw, (emb_size, D), dtype=jnp.float32) * 0.1
        bias = jax.random.normal(kb, (emb_size,), dtype=jnp.float32) * 0.1
        cls_token = jax.random.normal(kc, (1, 1, emb_size), dtype=jnp.float32)
        positions = jax.random.normal(kp, (1, 1, emb_size), dtype=jnp.float32)

        fn = jax.jit(functools.partial(patch_embedding_linear,
                                       patch_size=patch_size,
                                       tokens_per_tile=tokens_per_tile))
        out = jax.block_until_ready(fn(x, weight, bias, cls_token, positions))
        ref = _reference(x, weight, bias, cls_token, positions,
                         patch_size=patch_size)
        N = H * (W // patch_size)
        assert out.shape == (B, N + 1, emb_size), out.shape
        err = float(jnp.max(jnp.abs(out - ref)))
        assert err < 1e-4, err

    key = jax.random.PRNGKey(0)
    k1, k2 = jax.random.split(key)
    # Primary config (module-consistent small shapes): B=2, C=4, 16x16 spatial,
    # patch_size=4, emb_size=32  -> G=4 packed, lane-dense output rows.
    run_case(k1, 2, 4, 16, 16, 4, 32, 1024)
    # Secondary config: exercises the G=1 fallback and a multi-tile token grid.
    run_case(k2, 1, 3, 8, 20, 5, 48, 16)

    print("KERNEL_OK")
</pallas_src>

<mosaic_0001>
module attributes {stable_mosaic.version = 11 : i64} {
  func.func @_patch_embed_kernel(%arg0: i32, %arg1: i32, %arg2: i32, %arg3: memref<1x1x16x16xf32, #tpu.memory_space<vmem>>, %arg4: memref<4x16x128xf32, #tpu.memory_space<vmem>>, %arg5: memref<1x128xf32, #tpu.memory_space<vmem>>, %arg6: memref<1x16x128xf32, #tpu.memory_space<vmem>>, %arg7: memref<16x128xf32, #tpu.memory_space<vmem>>) attributes {dimension_semantics = [#tpu.dimension_semantics<parallel>, #tpu.dimension_semantics<parallel>, #tpu.dimension_semantics<arbitrary>], iteration_bounds = array<i64: 2, 1, 4>, scalar_prefetch = 0 : i64, scratch_operands = 1 : i64, tpu.core_type = #tpu.core_type<tc>, window_params = [{transform_indices = @transform_0, window_bounds = array<i64: 1, 1, 16, 16>}, {pipeline_mode = #tpu.pipeline_mode<synchronous>, transform_indices = @transform_1, window_bounds = array<i64: 4, 16, 128>}, {pipeline_mode = #tpu.pipeline_mode<synchronous>, transform_indices = @transform_2, window_bounds = array<i64: 1, 128>}, {transform_indices = @transform_3, window_bounds = array<i64: 1, 16, 128>}]} {
    %c0_i32 = arith.constant 0 : i32
    %0 = arith.cmpi eq, %arg2, %c0_i32 : i32
    %1 = arith.extui %0 : i1 to i32
    %c0_i32_0 = arith.constant 0 : i32
    %2 = arith.cmpi ne, %1, %c0_i32_0 : i32
    scf.if %2 {
      %cst_11 = arith.constant 0.000000e+00 : f32
      %15 = vector.broadcast %cst_11 : f32 to vector<16x128xf32>
      %c0_12 = arith.constant 0 : index
      %c0_13 = arith.constant 0 : index
      %16 = vector.load %arg7[%c0_12, %c0_13] : memref<16x128xf32, #tpu.memory_space<vmem>>, vector<16x128xf32>
      tpu.vector_store %arg7[%c0_12, %c0_13], %15 {strides = array<i32>} : memref<16x128xf32, #tpu.memory_space<vmem>>, vector<16x128xf32>,
    } else {
    }
    %c0 = arith.constant 0 : index
    %c0_1 = arith.constant 0 : index
    %3 = vector.load %arg7[%c0, %c0_1] : memref<16x128xf32, #tpu.memory_space<vmem>>, vector<16x128xf32>
    %c0_2 = arith.constant 0 : index
    %c0_3 = arith.constant 0 : index
    %c0_4 = arith.constant 0 : index
    %c0_5 = arith.constant 0 : index
    %4 = vector.load %arg3[%c0_2, %c0_3, %c0_4, %c0_5] : memref<1x1x16x16xf32, #tpu.memory_space<vmem>>, vector<1x1x16x16xf32>
    %5 = vector.shape_cast %4 : vector<1x1x16x16xf32> to vector<16x16xf32>
    %6 = arith.index_cast %arg2 : i32 to index
    %c0_6 = arith.constant 0 : index
    %c0_7 = arith.constant 0 : index
    %7 = vector.load %arg4[%6, %c0_6, %c0_7] : memref<4x16x128xf32, #tpu.memory_space<vmem>>, vector<1x16x128xf32>
    %8 = vector.shape_cast %7 : vector<1x16x128xf32> to vector<16x128xf32>
    %cst = arith.constant dense<0.000000e+00> : vector<16x128xf32>
    %9 = tpu.matmul %5, %8, %cst {dimension_numbers = #tpu.dot_dimension_numbers<[1], [0], [0], [1], [0, 0, 1, 1], [], []>} : vector<16x16xf32>, vector<16x128xf32>, vector<16x128xf32> -> vector<16x128xf32>
    %10 = arith.addf %3, %9 : vector<16x128xf32>
    %c0_8 = arith.constant 0 : index
    %c0_9 = arith.constant 0 : index
    %11 = vector.load %arg7[%c0_8, %c0_9] : memref<16x128xf32, #tpu.memory_space<vmem>>, vector<16x128xf32>
    tpu.vector_store %arg7[%c0_8, %c0_9], %10 {strides = array<i32>} : memref<16x128xf32, #tpu.memory_space<vmem>>, vector<16x128xf32>,
    %c3_i32 = arith.constant 3 : i32
    %12 = arith.cmpi eq, %arg2, %c3_i32 : i32
    %13 = arith.extui %12 : i1 to i32
    %c0_i32_10 = arith.constant 0 : i32
    %14 = arith.cmpi ne, %13, %c0_i32_10 : i32
    scf.if %14 {
      %c0_11 = arith.constant 0 : index
      %c0_12 = arith.constant 0 : index
      %15 = vector.load %arg7[%c0_11, %c0_12] : memref<16x128xf32, #tpu.memory_space<vmem>>, vector<16x128xf32>
      %c0_13 = arith.constant 0 : index
      %c0_14 = arith.constant 0 : index
      %16 = vector.load %arg5[%c0_13, %c0_14] : memref<1x128xf32, #tpu.memory_space<vmem>>, vector<1x128xf32>
      %17 = vector.broadcast %16 : vector<1x128xf32> to vector<16x128xf32>
      %18 = arith.addf %15, %17 : vector<16x128xf32>
      %c0_15 = arith.constant 0 : index
      %c0_16 = arith.constant 0 : index
      %c0_17 = arith.constant 0 : index
      %19 = vector.load %arg6[%c0_15, %c0_16, %c0_17] : memref<1x16x128xf32, #tpu.memory_space<vmem>>, vector<1x16x128xf32>
      %20 = vector.shape_cast %19 : vector<1x16x128xf32> to vector<16x128xf32>
      %21 = vector.shape_cast %18 : vector<16x128xf32> to vector<1x16x128xf32>
      tpu.vector_store %arg6[%c0_15, %c0_16, %c0_17], %21 {strides = array<i32>} : memref<1x16x128xf32, #tpu.memory_space<vmem>>, vector<1x16x128xf32>,
    } else {
    }
    return
  }
  func.func @transform_0(%arg0: i32, %arg1: i32, %arg2: i32) -> (i32, i32, i32, i32) {
    %c0_i32 = arith.constant 0 : i32
    %c0_i32_0 = arith.constant 0 : i32
    return %arg0, %arg2, %arg1, %c0_i32 : i32, i32, i32, i32
  }
  func.func @transform_1(%arg0: i32, %arg1: i32, %arg2: i32) -> (i32, i32, i32) {
    %c0_i32 = arith.constant 0 : i32
    %c0_i32_0 = arith.constant 0 : i32
    %c0_i32_1 = arith.constant 0 : i32
    %c0_i32_2 = arith.constant 0 : i32
    return %c0_i32, %c0_i32_0, %c0_i32_1 : i32, i32, i32
  }
  func.func @transform_2(%arg0: i32, %arg1: i32, %arg2: i32) -> (i32, i32) {
    %c0_i32 = arith.constant 0 : i32
    %c0_i32_0 = arith.constant 0 : i32
    %c0_i32_1 = arith.constant 0 : i32
    return %c0_i32, %c0_i32_0 : i32, i32
  }
  func.func @transform_3(%arg0: i32, %arg1: i32, %arg2: i32) -> (i32, i32, i32) {
    %c0_i32 = arith.constant 0 : i32
    %c0_i32_0 = arith.constant 0 : i32
    return %arg0, %arg1, %c0_i32 : i32, i32, i32
  }
}

</mosaic_0001>

<bundles_post_ra>
// kernel: patch_embedding_linear.1
= control target key start
LH: loop header
LB: loop body
LE: loop exit
PB: predicated region body
PF: predicated region fallthrough
CT: control target
= control target key end

     0   :  { %s517_s12 = smov 0   ;;  %s519_s13 = smov 0   ;;  %s585_s0 = inlined_call_operand.vmem [shape: f32[2,4,16,16], index: 0, kind: input, shape index: {}]   ;;  %s586_s1 = inlined_call_operand.vmem [shape: f32[4,16,128], index: 1, kind: input, shape index: {}]   ;;  %s587_s2 = inlined_call_operand.vmem [shape: f32[1,128], index: 2, kind: input, shape index: {}]   ;;  %s588_s3 = inlined_call_operand.vmem [shape: f32[2,16,128], index: 3, kind: output, shape index: {}]  }
   0x1   :  { %s521_s14 = smov 0   ;;  %s523_s15 = smov 0  }
   0x2   :  { %s525_s16 = smov 0  }
   0x3 LB: > { %s25_s17 = sadd.s32 1, %s486_s14  ;;  %s32_s18 = sadd.s32 1, %s490_s15  ;;  %s494_s16 = sphi %s525_s16, %s13_s16   ;;  %s490_s15 = sphi %s523_s15, %s592_s15   ;;  %s486_s14 = sphi %s521_s14, %s591_s14   ;;  %s482_s13 = sphi %s519_s13, %s590_s13   ;;  %s478_s12 = sphi %s517_s12, %s589_s12  }
   0x4   : > { %p26_p0 = scmp.ge.s32.totalorder %s25_s17, 4  ;;  %p398_p1 = scmp.ge.s32.totalorder %s494_s16, 1 }
   0x5   : > { %p171_p2 = scmp.lt.s32.totalorder %s494_s16, 9 }
   0x6   : > { %s594_s17 = smov (%p26_p0, %s25_s17), 0  ;;  %s596_s18 = smov (!%p26_p0, %s32_s18), %s490_s15 }
   0x7   : > { %p172_p3 = pnand %p398_p1, %p171_p2  ;;  %p34_p4 = scmp.ge.s32.totalorder %s596_s18, 2 }
   0x8   : > { %p208_p5 = scmp.lt.s32.totalorder (!%p172_p3), %s482_s13, 1  ;;  %p210_p6 = scmp.lt.s32.totalorder (!%p172_p3), %s478_s12, 3 }
   0x9   : > { %s598_s18 = smov (%p34_p4, %s596_s18), 0  ;;  %175 = sbr.rel (%p172_p3) target bundleno = 172 (0xac), region = 32 }
   0xa   : > { %p404_p7 = scmp.ne.s32.totalorder (!%p172_p3), %s478_s12, 0 }
   0xe   : > { %s600_s13 = smov (!%p208_p5, %s482_s13), 1 }
   0xf   : > { %s211_s19 = scalar_select %p210_p6, %s478_s12, 3 }
  0x10   : > { %s400_s20 = sshll.u32 %s600_s13, 3  ;;  %s411_s21 = sshll.u32 %s600_s13, 4 }
  0x11   : > { %s399_s22 = sshll.u32 %s211_s19, 1  ;;  %s554_s25 = scalar_lea.vmem %s588_s3, %s411_s21 }
  0x12   : > { %s217_s26 = sadd.s32 %s400_s20, %s399_s22  ;;  %234 = sbr.rel (%p404_p7) target bundleno = 26 (0x1a), region = 36 }
  0x13   : > { %s401_s27 = sshll.u32 %s217_s26, 3 }
  0x14   : > { %s219_s30 = scalar_lea.vmem %s585_s0, %s401_s27 }
  0x17   : > { %v496_v0 = vmov 0.0  }
  0x18   : > { %235 = vst [vmem:[#allocation2] sm:$0xff] %v496_v0 }
  0x19   : > { %236 = vst [vmem:[#allocation2 + $0x8] sm:$0xff] %v496_v0 }
  0x1a PF: > { %s405_s4 = sshll.u32 %s478_s12, 4  ;;  %v239_v3 = vld [vmem:[%s219_s30] sm:$0xff]  ;;  %vm245_vm0 = vcmask 130048   ;;  %v240_v4 = vld [vmem:[%s219_s30 + $0x8] sm:$0xff]  ;;  %p408_p8 = scmp.ne.s32.totalorder %s478_s12, 3 }
  0x1b   : > { %s242_s7 = scalar_lea.vmem %s586_s1, %s405_s4 }
  0x1c   : > { %v244_v1 = vld [vmem:[%s242_s7 + $0x8] sm:$0xff]  ;;  %v243_v2 = vld [vmem:[%s242_s7] sm:$0xff] }
  0x1d   : > { %266 = vmatpush.msra.mxu0 %v244_v1  ;;  %412 = vmatpush.msra.mxu1 %v244_v1 }
  0x1f   : > { %267 = vmatpush.msra.mxu0 %v243_v2  ;;  %413 = vmatpush.msra.mxu1 %v243_v2  ;;  %v237_v5 = vld [vmem:[#allocation2] sm:$0xff] }
  0x20   : > { %406 = vmatmul.msk.f32.vlgmr.msra.gmra.mxu0 %vm245_vm0, %v239_v3  ;;  %407 = vmatmul.msk.f32.vlgmr.msra.gmra.mxu1 %vm245_vm0, %v240_v4  ;;  %v238_v6 = vld [vmem:[#allocation2 + $0x8] sm:$0xff] }
  0x9d   : > { %v269_v7 = vpop.f32.mrf.mxu0  ;;  %v272_v8 = vpop.f32.mrf.mxu1  ;;  %282 = sbr.rel (%p408_p8) target bundleno = 172 (0xac), region = 40 }
  0x9e   : > { %v275_v9 = vadd.f32 %v269_v7, %v237_v5  ;;  %v276_v10 = vadd.f32 %v272_v8, %v238_v6 }
  0xa0   : > { %277 = vst [vmem:[#allocation2] sm:$0xff] %v275_v9 }
  0xa1   : > { %278 = vst [vmem:[#allocation2 + $0x8] sm:$0xff] %v276_v10 }
  0xa2   : > { %v455_v12 = vld [vmem:[%s587_s2] ss:$0 sm:$0xff] }
  0xa7   : > { %v283_v11 = vld [vmem:[#allocation2] sm:$0xff] }
  0xa8   : > { %v284_v13 = vld [vmem:[#allocation2 + $0x8] sm:$0xff]  ;;  %v289_v14 = vadd.f32 %v455_v12, %v283_v11 }
  0xa9   : > { %v290_v15 = vadd.f32 %v455_v12, %v284_v13 }
  0xaa   : > { %291 = vst [vmem:[%s554_s25] sm:$0xff] %v289_v14 }
  0xab   : > { %292 = vst [vmem:[%s554_s25 + $0x8] sm:$0xff] %v290_v15 }
  0xac PF: > { %s13_s16 = sadd.s32 1, %s494_s16   ;;  %s589_s12 = smov %s486_s14 }
  0xad   : > { %p10_p9 = scmp.ge.s32.totalorder %s13_s16, 10   ;;  %s590_s13 = smov %s490_s15 }
  0xae   : > { %s591_s14 = smov %s594_s17  ;;  %s592_s15 = smov %s598_s18 }
  0xaf   :  { %12 = sbr.rel (!%p10_p9) target bundleno = 3 (0x3), region = 71 }

</bundles_post_ra>
